<compile_context>
chip_gen: v7x
topology: tpu7x:2x2x1
jax: 0.10.0
libtpu: 0.0.40
codegen_flags: <defaults>
</compile_context>

<pallas_src>
import functools

import jax
import jax.numpy as jnp
import numpy as np
from jax.experimental import pallas as pl
from jax.experimental.pallas import tpu as pltpu

LANE = 128                       # TPU lane width (last-dim tiling unit)


def _tpu_vmem_capacity_bytes():
    try:
        return int(pltpu.get_tpu_info().vmem_capacity_bytes)
    except Exception:
        return 64 * 1024 * 1024  # conservative fallback (v7x per-TC VMEM)


_VMEM_CAP = _tpu_vmem_capacity_bytes()
if _VMEM_CAP >= 96 * 1024 * 1024:
    # v5e / v6e: 128 MiB physical VMEM -> use most of it.
    _VMEM_LIMIT_BYTES = 100 * 1024 * 1024
    _FUSED_VMEM_BUDGET = 90 * 1024 * 1024
    _XW_RESIDENT_BUDGET = 24 * 1024 * 1024
else:
    # v7x: 64 MiB per TC, 2 TCs per chip.  Keep the (single-TC) fused cutoff
    # low so medium graphs take the 2-core tiled path instead.
    _VMEM_LIMIT_BYTES = 48 * 1024 * 1024
    _FUSED_VMEM_BUDGET = 24 * 1024 * 1024
    _XW_RESIDENT_BUDGET = 8 * 1024 * 1024


def _round_up(x, m):
    return (x + m - 1) // m * m


def _pad2(x, rows, cols):
    return jnp.pad(x, ((0, rows - x.shape[0]), (0, cols - x.shape[1])))


def _fused_vmem_bytes(n_pad, f_in_pad, f_hid_pad, num_layers):
    """Conservative VMEM estimate for the fully-fused kernel."""
    a = n_pad * n_pad * 2                              # bf16 A_hat
    x = n_pad * f_in_pad * 2                           # bf16 features
    w0 = f_in_pad * f_hid_pad * 2                      # bf16 layer-0 W
    wr = max(num_layers - 1, 1) * f_hid_pad * f_hid_pad * 2
    b = num_layers * f_hid_pad * 4                     # f32 bias stack
    out = n_pad * f_hid_pad * 4                        # f32 output
    io = 2 * (a + x + w0 + wr + b + out)               # default double-buffering
    z = n_pad * f_hid_pad * 2                          # bf16 Z scratch
    tmp = 3 * n_pad * max(f_in_pad, f_hid_pad) * 4     # f32 xw/axw/z intermediates
    return io + z + tmp + (4 << 20)                    # + Mosaic internal scratch


# ---------------------------------------------------------------------------
# Fused small-graph kernel: all layers in one pallas_call.
#   A_hat resident in VMEM, Z kept in a VMEM scratch across layers.
#   Layer 0 reads X (f_in_pad wide) directly; later layers use the f_hid_pad Z.
# ---------------------------------------------------------------------------
def _gconv_fused_kernel(a_ref, x_ref, w0_ref, wr_ref, b_ref, alpha_ref,
                        o_ref, z_ref, *, num_layers):
    alpha = alpha_ref[...]                               # [1, F] f32, loaded once
    for l in range(num_layers):                          # static unroll
        z_in = x_ref[...] if l == 0 else z_ref[...]
        w = w0_ref[...] if l == 0 else wr_ref[l - 1]
        # X @ W  (bf16 x bf16 -> f32 accumulate on the MXU)
        xw = jnp.dot(z_in, w, preferred_element_type=jnp.float32)
        # A_hat @ (X W)
        axw = jnp.dot(a_ref[...], xw.astype(jnp.bfloat16),
                      preferred_element_type=jnp.float32)
        z = axw + b_ref[l]                               # f32 bias add
        z = jnp.where(z > 0, z, alpha * z)               # f32 per-channel PReLU
        if l == num_layers - 1:
            o_ref[...] = z
        else:
            z_ref[...] = z.astype(jnp.bfloat16)


def gconv_fused(a_pad, x_pad, w0, w_rest, b_stack, alpha, num_layers):
    n_pad = a_pad.shape[0]
    f_hid_pad = w0.shape[1]
    kernel = functools.partial(_gconv_fused_kernel, num_layers=num_layers)
    return pl.pallas_call(
        kernel,
        out_shape=jax.ShapeDtypeStruct((n_pad, f_hid_pad), jnp.float32),
        grid=(1,),
        in_specs=[
            pl.BlockSpec(a_pad.shape, lambda i: (0, 0)),
            pl.BlockSpec(x_pad.shape, lambda i: (0, 0)),
            pl.BlockSpec(w0.shape, lambda i: (0, 0)),
            pl.BlockSpec(w_rest.shape, lambda i: (0, 0, 0)),
            pl.BlockSpec(b_stack.shape, lambda i: (0, 0, 0)),
            pl.BlockSpec(alpha.shape, lambda i: (0, 0)),
        ],
        out_specs=pl.BlockSpec((n_pad, f_hid_pad), lambda i: (0, 0)),
        scratch_shapes=[pltpu.VMEM((n_pad, f_hid_pad), jnp.bfloat16)],
        compiler_params=pltpu.CompilerParams(
            dimension_semantics=("arbitrary",),
            vmem_limit_bytes=_VMEM_LIMIT_BYTES),
    )(a_pad, x_pad, w0, w_rest, b_stack, alpha)


# ---------------------------------------------------------------------------
# Tiled large-graph path, kernel 1 (layer 0 only): XW = X @ W, row-tiled.
# ---------------------------------------------------------------------------
def _xw_kernel(x_ref, w_ref, o_ref):
    o_ref[...] = jnp.dot(x_ref[...], w_ref[...],
                         preferred_element_type=jnp.float32).astype(o_ref.dtype)


def xw_matmul(x, w, tm):
    n_pad, f_in = x.shape
    f_out = w.shape[1]
    return pl.pallas_call(
        _xw_kernel,
        out_shape=jax.ShapeDtypeStruct((n_pad, f_out), jnp.bfloat16),
        grid=(n_pad // tm,),
        in_specs=[pl.BlockSpec((tm, f_in), lambda i: (i, 0)),
                  pl.BlockSpec((f_in, f_out), lambda i: (0, 0))],
        out_specs=pl.BlockSpec((tm, f_out), lambda i: (i, 0)),
        compiler_params=pltpu.CompilerParams(
            dimension_semantics=("parallel",),
            vmem_limit_bytes=_VMEM_LIMIT_BYTES),
    )(x, w)


# ---------------------------------------------------------------------------
# Tiled large-graph path, kernel 2: out = prelu(A_hat @ XW + b)   (last layer)
#                      or          out = prelu(A_hat @ XW + b) @ W_next
#                                        (intermediate layers: next X@W fused
#                                         into the finalize epilogue).
#   2-D grid: (row tiles [parallel], K tiles [arbitrary, last]) with a VMEM
#   f32 accumulator and pl.when init/finalize.
# ---------------------------------------------------------------------------
def _agg_accumulate(a_ref, xw_ref, acc_ref, xw_resident):
    k = pl.program_id(1)

    @pl.when(k == 0)
    def _():
        acc_ref[...] = jnp.zeros_like(acc_ref)

    if xw_resident:
        tk = a_ref.shape[1]
        start = pl.multiple_of(k * tk, tk)
        xw_tile = xw_ref[pl.ds(start, tk), :]          # slice of resident XW
    else:
        xw_tile = xw_ref[...]                          # streamed (tk, F) tile

    acc_ref[...] += jnp.dot(a_ref[...], xw_tile,
                            preferred_element_type=jnp.float32)


def _agg_prelu_kernel(a_ref, xw_ref, b_ref, alpha_ref, o_ref, acc_ref, *,
                      xw_resident):
    _agg_accumulate(a_ref, xw_ref, acc_ref, xw_resident)

    @pl.when(pl.program_id(1) == pl.num_programs(1) - 1)
    def _():
        z = acc_ref[...] + b_ref[...]                  # f32 bias
        o_ref[...] = jnp.where(z > 0, z, alpha_ref[...] * z).astype(o_ref.dtype)


def _agg_prelu_next_kernel(a_ref, xw_ref, b_ref, alpha_ref, wn_ref, o_ref,
                           acc_ref, *, xw_resident):
    _agg_accumulate(a_ref, xw_ref, acc_ref, xw_resident)

    @pl.when(pl.program_id(1) == pl.num_programs(1) - 1)
    def _():
        z = acc_ref[...] + b_ref[...]
        z = jnp.where(z > 0, z, alpha_ref[...] * z)
        # Next layer's X @ W fused into the epilogue: saves one HBM roundtrip
        # of Z and one pallas_call per intermediate layer.
        o_ref[...] = jnp.dot(z.astype(jnp.bfloat16), wn_ref[...],
                             preferred_element_type=jnp.float32).astype(o_ref.dtype)


def agg_bias_prelu(a_pad, xw, b, alpha, w_next, tm, tk, out_dtype, xw_resident):
    # TODO(synk): for sparse graphs at scale, skip all-zero A_hat tiles via a
    # PrefetchScalarGridSpec block mask instead of streaming the dense N^2.
    n_pad = a_pad.shape[0]
    f_pad = xw.shape[1]
    if xw_resident:
        # Whole XW as one constant-index block: DMA'd once, reused every step.
        xw_spec = pl.BlockSpec((n_pad, f_pad), lambda i, k: (0, 0))
    else:
        xw_spec = pl.BlockSpec((tk, f_pad), lambda i, k: (k, 0))

    in_specs = [
        pl.BlockSpec((tm, tk), lambda i, k: (i, k)),     # A_hat tile
        xw_spec,                                         # XW
        pl.BlockSpec((1, f_pad), lambda i, k: (0, 0)),   # bias (loaded once)
        pl.BlockSpec((1, f_pad), lambda i, k: (0, 0)),   # alpha (loaded once)
    ]
    if w_next is not None:
        in_specs.append(pl.BlockSpec(w_next.shape, lambda i, k: (0, 0)))
        kernel = functools.partial(_agg_prelu_next_kernel, xw_resident=xw_resident)
        out_f = w_next.shape[1]
        args = (a_pad, xw, b, alpha, w_next)
    else:
        kernel = functools.partial(_agg_prelu_kernel, xw_resident=xw_resident)
        out_f = f_pad
        args = (a_pad, xw, b, alpha)

    return pl.pallas_call(
        kernel,
        out_shape=jax.ShapeDtypeStruct((n_pad, out_f), out_dtype),
        grid=(n_pad // tm, n_pad // tk),
        in_specs=in_specs,
        out_specs=pl.BlockSpec((tm, out_f), lambda i, k: (i, 0)),
        scratch_shapes=[pltpu.VMEM((tm, f_pad), jnp.float32)],
        compiler_params=pltpu.CompilerParams(
            dimension_semantics=("parallel", "arbitrary"),
            vmem_limit_bytes=_VMEM_LIMIT_BYTES),
    )(*args)


# ---------------------------------------------------------------------------
# Plain-JAX glue: dense normalized adjacency (GCN normalization), built
# directly at padded size to avoid an extra N^2 pad copy.
# ---------------------------------------------------------------------------
def build_gcn_adj(edge_index, edge_weight, num_nodes, n_pad=None):
    if n_pad is None:
        n_pad = num_nodes
    src = edge_index[0]
    dst = edge_index[1]
    if edge_weight is None:
        edge_weight = jnp.ones(src.shape[0], dtype=jnp.float32)
    loops = jnp.arange(num_nodes, dtype=src.dtype)
    src = jnp.concatenate([src, loops])
    dst = jnp.concatenate([dst, loops])
    ew = jnp.concatenate(
        [edge_weight.astype(jnp.float32), jnp.ones(num_nodes, jnp.float32)])
    deg = jnp.zeros(num_nodes, jnp.float32).at[dst].add(ew)
    dinv = jnp.where(deg > 0, jax.lax.rsqrt(deg), 0.0)
    norm = dinv[src] * ew * dinv[dst]
    # A_hat[i, j] = norm for edge j->i  =>  out = A_hat @ X ; scatter straight
    # into the padded (n_pad, n_pad) buffer (padded rows/cols stay zero).
    return jnp.zeros((n_pad, n_pad), jnp.float32).at[dst, src].add(norm)


# ---------------------------------------------------------------------------
# GConv module: parameter init + forward.
# ---------------------------------------------------------------------------
def init_gconv_params(key, input_dim, hidden_dim, num_layers):
    params = {"w": [], "b": []}
    for i in range(num_layers):
        f_in = input_dim if i == 0 else hidden_dim
        key, sub = jax.random.split(key)
        limit = (6.0 / (f_in + hidden_dim)) ** 0.5   # glorot uniform
        w = jax.random.uniform(sub, (f_in, hidden_dim), jnp.float32,
                               minval=-limit, maxval=limit)
        params["w"].append(w)
        params["b"].append(jnp.zeros((1, hidden_dim), jnp.float32))
    params["alpha"] = jnp.full((1, hidden_dim), 0.25, jnp.float32)  # PReLU init
    return params


@functools.partial(jax.jit, static_argnames=("num_nodes", "path"))
def gconv_forward(params, x, edge_index, edge_weight, num_nodes, path="auto"):
    num_layers = len(params["w"])
    f_in = x.shape[1]
    f_hid = params["w"][0].shape[1]
    f_in_pad = _round_up(max(f_in, LANE), LANE)
    f_hid_pad = _round_up(max(f_hid, LANE), LANE)

    n_pad_fused = _round_up(max(num_nodes, LANE), LANE)
    fused_bytes = _fused_vmem_bytes(n_pad_fused, f_in_pad, f_hid_pad, num_layers)
    if path == "auto":
        use_fused = fused_bytes <= _FUSED_VMEM_BUDGET
    else:
        use_fused = (path == "fused")

    alpha_p = _pad2(params["alpha"], 1, f_hid_pad)
    w_pads = [
        _pad2(w, f_in_pad if i == 0 else f_hid_pad, f_hid_pad).astype(jnp.bfloat16)
        for i, w in enumerate(params["w"])
    ]
    b_pads = [_pad2(b, 1, f_hid_pad) for b in params["b"]]

    if use_fused:
        n_pad = n_pad_fused
        a_pad = build_gcn_adj(edge_index, edge_weight, num_nodes,
                              n_pad).astype(jnp.bfloat16)
        x_p = _pad2(x, n_pad, f_in_pad).astype(jnp.bfloat16)
        w0 = w_pads[0]
        if num_layers > 1:
            w_rest = jnp.stack(w_pads[1:])
        else:
            w_rest = jnp.zeros((1, f_hid_pad, f_hid_pad), jnp.bfloat16)  # unread
        b_stack = jnp.stack(b_pads)
        out = gconv_fused(a_pad, x_p, w0, w_rest, b_stack, alpha_p, num_layers)
    else:
        # Tiled path: node dim padded to the K tile (never 128x128 tiles); row
        # tile grows to 1024 when XW is streamed so re-streamed-XW bytes shrink.
        tk = 512
        n_pad = _round_up(max(num_nodes, 1), tk)
        xw_resident = 2 * (n_pad * f_hid_pad * 2) <= _XW_RESIDENT_BUDGET
        if xw_resident:
            tm = tk
        else:
            tm = 1024
            n_pad = _round_up(max(num_nodes, 1), tm)

        a_pad = build_gcn_adj(edge_index, edge_weight, num_nodes,
                              n_pad).astype(jnp.bfloat16)
        x_p = _pad2(x, n_pad, f_in_pad).astype(jnp.bfloat16)

        xw = xw_matmul(x_p, w_pads[0], 512)             # layer-0 X @ W only
        z_or_xw = xw
        for l in range(num_layers):
            last = (l == num_layers - 1)
            w_next = None if last else w_pads[l + 1]
            out_dtype = jnp.float32 if last else jnp.bfloat16
            z_or_xw = agg_bias_prelu(a_pad, xw, b_pads[l], alpha_p, w_next,
                                     tm, tk, out_dtype, xw_resident)
            if not last:
                xw = z_or_xw                            # already next layer's XW
        out = z_or_xw

    return out[:num_nodes, :f_hid].astype(jnp.float32)


def gconv_reference(params, x, edge_index, edge_weight, num_nodes):
    """Plain-JAX f32 reference for correctness checks."""
    a_hat = build_gcn_adj(edge_index, edge_weight, num_nodes)
    z = x
    alpha = params["alpha"]
    for w, b in zip(params["w"], params["b"]):
        z = a_hat @ (z @ w) + b
        z = jnp.where(z > 0, z, alpha * z)
    return z


# ---------------------------------------------------------------------------
if __name__ == "__main__":
    key = jax.random.PRNGKey(0)

    num_nodes = 16
    input_dim = 8
    hidden_dim = 32
    num_layers = 2
    num_edges = 40

    k_feat, k_src, k_dst, k_w, k_param = jax.random.split(key, 5)
    x = jax.random.normal(k_feat, (num_nodes, input_dim), jnp.float32)
    edge_index = jnp.stack([
        jax.random.randint(k_src, (num_edges,), 0, num_nodes, jnp.int32),
        jax.random.randint(k_dst, (num_edges,), 0, num_nodes, jnp.int32),
    ])
    edge_weight = jax.random.uniform(k_w, (num_edges,), jnp.float32,
                                     minval=0.5, maxval=1.5)

    params = init_gconv_params(k_param, input_dim, hidden_dim, num_layers)

    # Small graph -> fully fused single-kernel path (also what "auto" picks).
    out_fused = gconv_forward(params, x, edge_index, edge_weight, num_nodes,
                              path="fused")
    # Tiled / pipelined path (what large graphs use); same small shapes here.
    out_tiled = gconv_forward(params, x, edge_index, edge_weight, num_nodes,
                              path="tiled")
    jax.block_until_ready((out_fused, out_tiled))

    assert out_fused.shape == (num_nodes, hidden_dim)
    assert out_tiled.shape == (num_nodes, hidden_dim)
    assert jnp.all(jnp.isfinite(out_fused)) and jnp.all(jnp.isfinite(out_tiled))

    ref = gconv_reference(params, x, edge_index, edge_weight, num_nodes)
    np.testing.assert_allclose(np.asarray(out_fused), np.asarray(out_tiled),
                               rtol=2e-2, atol=2e-2)
    np.testing.assert_allclose(np.asarray(out_fused), np.asarray(ref),
                               rtol=5e-2, atol=5e-2)

    print("KERNEL_OK")
</pallas_src>

<mosaic_0001>
module attributes {stable_mosaic.version = 11 : i64} {
  func.func @_gconv_fused_kernel(%arg0: i32, %arg1: memref<128x128xbf16, #tpu.memory_space<vmem>>, %arg2: memref<128x128xbf16, #tpu.memory_space<vmem>>, %arg3: memref<128x128xbf16, #tpu.memory_space<vmem>>, %arg4: memref<1x128x128xbf16, #tpu.memory_space<vmem>>, %arg5: memref<2x1x128xf32, #tpu.memory_space<vmem>>, %arg6: memref<1x128xf32, #tpu.memory_space<vmem>>, %arg7: memref<128x128xf32, #tpu.memory_space<vmem>>, %arg8: memref<128x128xbf16, #tpu.memory_space<vmem>>) attributes {dimension_semantics = [#tpu.dimension_semantics<arbitrary>], iteration_bounds = array<i64: 1>, scalar_prefetch = 0 : i64, scratch_operands = 1 : i64, tpu.core_type = #tpu.core_type<tc>, window_params = [{pipeline_mode = #tpu.pipeline_mode<synchronous>, transform_indices = @transform_0, window_bounds = array<i64: 128, 128>}, {pipeline_mode = #tpu.pipeline_mode<synchronous>, transform_indices = @transform_1, window_bounds = array<i64: 128, 128>}, {pipeline_mode = #tpu.pipeline_mode<synchronous>, transform_indices = @transform_2, window_bounds = array<i64: 128, 128>}, {pipeline_mode = #tpu.pipeline_mode<synchronous>, transform_indices = @transform_3, window_bounds = array<i64: 1, 128, 128>}, {pipeline_mode = #tpu.pipeline_mode<synchronous>, transform_indices = @transform_4, window_bounds = array<i64: 2, 1, 128>}, {pipeline_mode = #tpu.pipeline_mode<synchronous>, transform_indices = @transform_5, window_bounds = array<i64: 1, 128>}, {pipeline_mode = #tpu.pipeline_mode<synchronous>, transform_indices = @transform_6, window_bounds = array<i64: 128, 128>}]} {
    %c0 = arith.constant 0 : index
    %c0_0 = arith.constant 0 : index
    %0 = vector.load %arg6[%c0, %c0_0] : memref<1x128xf32, #tpu.memory_space<vmem>>, vector<1x128xf32>
    %c0_1 = arith.constant 0 : index
    %c0_2 = arith.constant 0 : index
    %1 = vector.load %arg2[%c0_1, %c0_2] : memref<128x128xbf16, #tpu.memory_space<vmem>>, vector<128x128xbf16>
    %c0_3 = arith.constant 0 : index
    %c0_4 = arith.constant 0 : index
    %2 = vector.load %arg3[%c0_3, %c0_4] : memref<128x128xbf16, #tpu.memory_space<vmem>>, vector<128x128xbf16>
    %cst = arith.constant dense<0.000000e+00> : vector<128x128xf32>
    %3 = tpu.matmul %1, %2, %cst {dimension_numbers = #tpu.dot_dimension_numbers<[1], [0], [0], [1], [0, 0, 1, 1], [], []>} : vector<128x128xbf16>, vector<128x128xbf16>, vector<128x128xf32> -> vector<128x128xf32>
    %c0_5 = arith.constant 0 : index
    %c0_6 = arith.constant 0 : index
    %4 = vector.load %arg1[%c0_5, %c0_6] : memref<128x128xbf16, #tpu.memory_space<vmem>>, vector<128x128xbf16>
    %5 = arith.truncf %3 : vector<128x128xf32> to vector<128x128xbf16>
    %cst_7 = arith.constant dense<0.000000e+00> : vector<128x128xf32>
    %6 = tpu.matmul %4, %5, %cst_7 {dimension_numbers = #tpu.dot_dimension_numbers<[1], [0], [0], [1], [0, 0, 1, 1], [], []>} : vector<128x128xbf16>, vector<128x128xbf16>, vector<128x128xf32> -> vector<128x128xf32>
    %c0_8 = arith.constant 0 : index
    %c0_9 = arith.constant 0 : index
    %c0_10 = arith.constant 0 : index
    %7 = vector.load %arg5[%c0_8, %c0_9, %c0_10] : memref<2x1x128xf32, #tpu.memory_space<vmem>>, vector<1x1x128xf32>
    %8 = vector.shape_cast %7 : vector<1x1x128xf32> to vector<1x128xf32>
    %9 = vector.broadcast %8 : vector<1x128xf32> to vector<128x128xf32>
    %10 = arith.addf %6, %9 : vector<128x128xf32>
    %cst_11 = arith.constant 0.000000e+00 : f32
    %11 = vector.broadcast %cst_11 : f32 to vector<128x128xf32>
    %12 = arith.cmpf ogt, %10, %11 : vector<128x128xf32>
    %13 = vector.broadcast %0 : vector<1x128xf32> to vector<128x128xf32>
    %14 = arith.mulf %13, %10 : vector<128x128xf32>
    %15 = arith.select %12, %10, %14 : vector<128x128xi1>, vector<128x128xf32>
    %16 = arith.truncf %15 : vector<128x128xf32> to vector<128x128xbf16>
    %c0_12 = arith.constant 0 : index
    %c0_13 = arith.constant 0 : index
    %17 = vector.load %arg8[%c0_12, %c0_13] : memref<128x128xbf16, #tpu.memory_space<vmem>>, vector<128x128xbf16>
    tpu.vector_store %arg8[%c0_12, %c0_13], %16 {strides = array<i32>} : memref<128x128xbf16, #tpu.memory_space<vmem>>, vector<128x128xbf16>,
    %c0_14 = arith.constant 0 : index
    %c0_15 = arith.constant 0 : index
    %18 = vector.load %arg8[%c0_14, %c0_15] : memref<128x128xbf16, #tpu.memory_space<vmem>>, vector<128x128xbf16>
    %c0_16 = arith.constant 0 : index
    %c0_17 = arith.constant 0 : index
    %c0_18 = arith.constant 0 : index
    %19 = vector.load %arg4[%c0_16, %c0_17, %c0_18] : memref<1x128x128xbf16, #tpu.memory_space<vmem>>, vector<1x128x128xbf16>
    %20 = vector.shape_cast %19 : vector<1x128x128xbf16> to vector<128x128xbf16>
    %cst_19 = arith.constant dense<0.000000e+00> : vector<128x128xf32>
    %21 = tpu.matmul %18, %20, %cst_19 {dimension_numbers = #tpu.dot_dimension_numbers<[1], [0], [0], [1], [0, 0, 1, 1], [], []>} : vector<128x128xbf16>, vector<128x128xbf16>, vector<128x128xf32> -> vector<128x128xf32>
    %c0_20 = arith.constant 0 : index
    %c0_21 = arith.constant 0 : index
    %22 = vector.load %arg1[%c0_20, %c0_21] : memref<128x128xbf16, #tpu.memory_space<vmem>>, vector<128x128xbf16>
    %23 = arith.truncf %21 : vector<128x128xf32> to vector<128x128xbf16>
    %cst_22 = arith.constant dense<0.000000e+00> : vector<128x128xf32>
    %24 = tpu.matmul %22, %23, %cst_22 {dimension_numbers = #tpu.dot_dimension_numbers<[1], [0], [0], [1], [0, 0, 1, 1], [], []>} : vector<128x128xbf16>, vector<128x128xbf16>, vector<128x128xf32> -> vector<128x128xf32>
    %c1 = arith.constant 1 : index
    %c0_23 = arith.constant 0 : index
    %c0_24 = arith.constant 0 : index
    %25 = vector.load %arg5[%c1, %c0_23, %c0_24] : memref<2x1x128xf32, #tpu.memory_space<vmem>>, vector<1x1x128xf32>
    %26 = vector.shape_cast %25 : vector<1x1x128xf32> to vector<1x128xf32>
    %27 = vector.broadcast %26 : vector<1x128xf32> to vector<128x128xf32>
    %28 = arith.addf %24, %27 : vector<128x128xf32>
    %cst_25 = arith.constant 0.000000e+00 : f32
    %29 = vector.broadcast %cst_25 : f32 to vector<128x128xf32>
    %30 = arith.cmpf ogt, %28, %29 : vector<128x128xf32>
    %31 = vector.broadcast %0 : vector<1x128xf32> to vector<128x128xf32>
    %32 = arith.mulf %31, %28 : vector<128x128xf32>
    %33 = arith.select %30, %28, %32 : vector<128x128xi1>, vector<128x128xf32>
    %c0_26 = arith.constant 0 : index
    %c0_27 = arith.constant 0 : index
    %34 = vector.load %arg7[%c0_26, %c0_27] : memref<128x128xf32, #tpu.memory_space<vmem>>, vector<128x128xf32>
    tpu.vector_store %arg7[%c0_26, %c0_27], %33 {strides = array<i32>} : memref<128x128xf32, #tpu.memory_space<vmem>>, vector<128x128xf32>,
    return
  }
  func.func @transform_0(%arg0: i32) -> (i32, i32) {
    %c0_i32 = arith.constant 0 : i32
    %c0_i32_0 = arith.constant 0 : i32
    %c0_i32_1 = arith.constant 0 : i32
    return %c0_i32, %c0_i32_0 : i32, i32
  }
  func.func @transform_1(%arg0: i32) -> (i32, i32) {
    %c0_i32 = arith.constant 0 : i32
    %c0_i32_0 = arith.constant 0 : i32
    %c0_i32_1 = arith.constant 0 : i32
    return %c0_i32, %c0_i32_0 : i32, i32
  }
  func.func @transform_2(%arg0: i32) -> (i32, i32) {
    %c0_i32 = arith.constant 0 : i32
    %c0_i32_0 = arith.constant 0 : i32
    %c0_i32_1 = arith.constant 0 : i32
    return %c0_i32, %c0_i32_0 : i32, i32
  }
  func.func @transform_3(%arg0: i32) -> (i32, i32, i32) {
    %c0_i32 = arith.constant 0 : i32
    %c0_i32_0 = arith.constant 0 : i32
    %c0_i32_1 = arith.constant 0 : i32
    %c0_i32_2 = arith.constant 0 : i32
    return %c0_i32, %c0_i32_0, %c0_i32_1 : i32, i32, i32
  }
  func.func @transform_4(%arg0: i32) -> (i32, i32, i32) {
    %c0_i32 = arith.constant 0 : i32
    %c0_i32_0 = arith.constant 0 : i32
    %c0_i32_1 = arith.constant 0 : i32
    %c0_i32_2 = arith.constant 0 : i32
    return %c0_i32, %c0_i32_0, %c0_i32_1 : i32, i32, i32
  }
  func.func @transform_5(%arg0: i32) -> (i32, i32) {
    %c0_i32 = arith.constant 0 : i32
    %c0_i32_0 = arith.constant 0 : i32
    %c0_i32_1 = arith.constant 0 : i32
    return %c0_i32, %c0_i32_0 : i32, i32
  }
  func.func @transform_6(%arg0: i32) -> (i32, i32) {
    %c0_i32 = arith.constant 0 : i32
    %c0_i32_0 = arith.constant 0 : i32
    %c0_i32_1 = arith.constant 0 : i32
    return %c0_i32, %c0_i32_0 : i32, i32
  }
}

</mosaic_0001>

<bundles_post_ra>
// kernel: gconv_forward.1
= control target key start
LH: loop header
LB: loop body
LE: loop exit
PB: predicated region body
PF: predicated region fallthrough
CT: control target
= control target key end

     0   :  { %s1468_s2 = inlined_call_operand.vmem [shape: bf16[128,128], index: 2, kind: input, shape index: {}]   ;;  %s1469_s1 = inlined_call_operand.vmem [shape: bf16[128,128], index: 1, kind: input, shape index: {}]   ;;  %s1470_s0 = inlined_call_operand.vmem [shape: bf16[128,128], index: 0, kind: input, shape index: {}]   ;;  %s1471_s3 = inlined_call_operand.vmem [shape: bf16[1,128,128], index: 3, kind: input, shape index: {}]   ;;  %s1472_s4 = inlined_call_operand.vmem [shape: f32[2,1,128], index: 4, kind: input, shape index: {}]   ;;  %s1473_s5 = inlined_call_operand.vmem [shape: f32[1,128], index: 5, kind: input, shape index: {}]   ;;  %s1474_s6 = inlined_call_operand.vmem [shape: f32[128,128], index: 6, kind: output, shape index: {}]  }
   0x1   :  { %v1146_v0 = vld [vmem:[%s1468_s2] sm:$0xff]   ;;  %v1147_v1 = vld [vmem:[%s1468_s2 + $0x8] sm:$0xff]   ;;  %v1148_v2 = vld [vmem:[%s1468_s2 + $0x10] sm:$0xff]  }
   0x2   :  { %1018 = vmatprep.subr.bf16.mxu0 %v1146_v0  ;;  %v1149_v3 = vld [vmem:[%s1468_s2 + $0x18] sm:$0xff]   ;;  %v1154_v4 = vld [vmem:[%s1469_s1] sm:$0xff]   ;;  %v1151_v6 = vld [vmem:[%s1468_s2 + $0x28] sm:$0xff]  }
   0x3   :  { %1019 = vmatpush3.bf16.msra.mxu0 %v1146_v0  ;;  %1034 = vmatprep.mubr.bf16.mxu0 %v1154_v4  ;;  %v1150_v5 = vld [vmem:[%s1468_s2 + $0x20] sm:$0xff]   ;;  %v1152_v7 = vld [vmem:[%s1468_s2 + $0x30] sm:$0xff]   ;;  %v1153_v8 = vld [vmem:[%s1468_s2 + $0x38] sm:$0xff]  }
   0x4   :  { %1020 = vmatprep.subr.bf16.mxu0 %v1147_v1  ;;  %v1155_v9 = vld [vmem:[%s1469_s1 + $0x8] sm:$0xff]   ;;  %v1156_v10 = vld [vmem:[%s1469_s1 + $0x10] sm:$0xff]   ;;  %v1157_v11 = vld [vmem:[%s1469_s1 + $0x18] sm:$0xff]  }
   0x5   :  { %v1158_v12 = vld [vmem:[%s1469_s1 + $0x20] sm:$0xff]   ;;  %v1159_v13 = vld [vmem:[%s1469_s1 + $0x28] sm:$0xff]   ;;  %v1160_v14 = vld [vmem:[%s1469_s1 + $0x30] sm:$0xff]  }
   0x6   :  { %v1161_v15 = vld [vmem:[%s1469_s1 + $0x38] sm:$0xff]   ;;  %v1162_v16 = vld [vmem:[%s1470_s0] sm:$0xff]   ;;  %v1171_v18 = vld [vmem:[%s1471_s3 + $0x8] sm:$0xff]  }
   0x7   :  { %1021 = vmatpush3.bf16.msra.mxu0 %v1147_v1  ;;  %1066 = vmatprep.mubr.bf16.mxu1 %v1162_v16  ;;  %v1170_v17 = vld [vmem:[%s1471_s3] sm:$0xff]   ;;  %v1172_v19 = vld [vmem:[%s1471_s3 + $0x10] sm:$0xff]   ;;  %v1173_v20 = vld [vmem:[%s1471_s3 + $0x18] sm:$0xff]  }
   0x8   :  { %1022 = vmatprep.subr.bf16.mxu0 %v1148_v2  ;;  %v1174_v21 = vld [vmem:[%s1471_s3 + $0x20] sm:$0xff]   ;;  %v1163_v46 = vld [vmem:[%s1470_s0 + $0x8] sm:$0xff]   ;;  %v1164_v47 = vld [vmem:[%s1470_s0 + $0x10] sm:$0xff]  }
   0x9   :  { %v1165_v48 = vld [vmem:[%s1470_s0 + $0x18] sm:$0xff]   ;;  %v1166_v49 = vld [vmem:[%s1470_s0 + $0x20] sm:$0xff]   ;;  %v1167_v50 = vld [vmem:[%s1470_s0 + $0x28] sm:$0xff]  }
   0xa   :  { %v1168_v51 = vld [vmem:[%s1470_s0 + $0x30] sm:$0xff]   ;;  %v1169_v52 = vld [vmem:[%s1470_s0 + $0x38] sm:$0xff]   ;;  %v1175_v53 = vld [vmem:[%s1471_s3 + $0x28] sm:$0xff]  }
   0xb   :  { %1023 = vmatpush3.bf16.msra.mxu0 %v1148_v2  ;;  %v1176_v54 = vld [vmem:[%s1471_s3 + $0x30] sm:$0xff]   ;;  %v1177_v55 = vld [vmem:[%s1471_s3 + $0x38] sm:$0xff]   ;;  %v1320_v56 = vld [vmem:[%s1472_s4] ss:$0 sm:$0xff] }
   0xc   :  { %1024 = vmatprep.subr.bf16.mxu0 %v1149_v3  ;;  %v1325_v57 = vld [vmem:[%s1473_s5] ss:$0 sm:$0xff] }
   0xf   :  { %1025 = vmatpush3.bf16.msra.mxu0 %v1149_v3 }
  0x10   :  { %1026 = vmatprep.subr.bf16.mxu0 %v1150_v5 }
  0x13   :  { %1027 = vmatpush3.bf16.msra.mxu0 %v1150_v5 }
  0x14   :  { %1028 = vmatprep.subr.bf16.mxu0 %v1151_v6 }
  0x17   :  { %1029 = vmatpush3.bf16.msra.mxu0 %v1151_v6 }
  0x18   :  { %1030 = vmatprep.subr.bf16.mxu0 %v1152_v7 }
  0x1b   :  { %1031 = vmatpush3.bf16.msra.mxu0 %v1152_v7 }
  0x1c   :  { %1032 = vmatprep.subr.bf16.mxu0 %v1153_v8 }
  0x1f   :  { %1033 = vmatpush3.bf16.msra.mxu0 %v1153_v8 }
  0x20   :  { %1082 = vmatprep.subr.bf16.mxu0 %v1170_v17 }
  0x22   :  { %1035 = vmatmul.mubr.bf16.vlgmr.msra.gmra.mrb[0].mxu0 %v1155_v9 }
  0x23   :  { %1038 = vmatprep.mubr.bf16.mxu0 %v1156_v10  ;;  %1083 = vmatpush3.bf16.msra.mxu0 %v1170_v17 }
  0x24   :  { %1084 = vmatprep.subr.bf16.mxu0 %v1171_v18 }
  0x27   :  { %1085 = vmatpush3.bf16.msra.mxu0 %v1171_v18 }
  0x28   :  { %1086 = vmatprep.subr.bf16.mxu0 %v1172_v19 }
  0x2a   :  { %1039 = vmatmul.mubr.bf16.gmra.mrb[4].mxu0 %v1157_v11 }
  0x2b   :  { %1042 = vmatprep.mubr.bf16.mxu0 %v1158_v12  ;;  %1087 = vmatpush3.bf16.msra.mxu0 %v1172_v19 }
  0x2c   :  { %1088 = vmatprep.subr.bf16.mxu0 %v1173_v20 }
  0x2f   :  { %1089 = vmatpush3.bf16.msra.mxu0 %v1173_v20 }
  0x30   :  { %1090 = vmatprep.subr.bf16.mxu0 %v1174_v21 }
  0x32   :  { %1043 = vmatmul.mubr.bf16.gmra.mrb[8].mxu0 %v1159_v13 }
  0x33   :  { %1046 = vmatprep.mubr.bf16.mxu0 %v1160_v14  ;;  %1091 = vmatpush3.bf16.msra.mxu0 %v1174_v21 }
  0x34   :  { %1092 = vmatprep.subr.bf16.mxu0 %v1175_v53 }
  0x37   :  { %1093 = vmatpush3.bf16.msra.mxu0 %v1175_v53 }
  0x38   :  { %1094 = vmatprep.subr.bf16.mxu0 %v1176_v54 }
  0x3a   :  { %1047 = vmatmul.mubr.bf16.gmra.mrb[12].mxu0 %v1161_v15 }
  0x3b   :  { %1095 = vmatpush3.bf16.msra.mxu0 %v1176_v54 }
  0x3c   :  { %1096 = vmatprep.subr.bf16.mxu0 %v1177_v55 }
  0x3f   :  { %1097 = vmatpush3.bf16.msra.mxu0 %v1177_v55 }
  0xf5   :  { %v1036_v22 = vpop.f32.mrb[0].mxu0 }
  0xf6   :  { %v187_v23 = vpop.f32.mrb[1].mxu0 }
  0xf7   :  { %v1037_v24 = vpop.f32.mrb[2].mxu0 }
  0xf8   :  { %v267_v25 = vpack.c.bf16 %v1037_v24, %v1036_v22  ;;  %v190_v26 = vpop.f32.mrb[3].mxu0 }
  0xf9   :  { %v266_v27 = vpack.c.bf16 %v190_v26, %v187_v23 }
  0xfb   :  { %1050 = vmatprep.subr.bf16.mxu1 %v266_v27 }
  0xfc   :  { %1051 = vmatpush3.bf16.msra.mxu1 %v266_v27 }
  0xfd   :  { %v1040_v28 = vpop.f32.mrb[4].mxu0  ;;  %1052 = vmatprep.subr.bf16.mxu1 %v267_v25 }
  0xfe   :  { %v203_v29 = vpop.f32.mrb[5].mxu0 }
  0xff   :  { %v1041_v30 = vpop.f32.mrb[6].mxu0 }
 0x100   :  { %v269_v31 = vpack.c.bf16 %v1041_v30, %v1040_v28  ;;  %v206_v32 = vpop.f32.mrb[7].mxu0  ;;  %1053 = vmatpush3.bf16.msra.mxu1 %v267_v25 }
 0x101   :  { %v268_v33 = vpack.c.bf16 %v206_v32, %v203_v29 }
 0x103   :  { %1054 = vmatprep.subr.bf16.mxu1 %v268_v33 }
 0x104   :  { %1055 = vmatpush3.bf16.msra.mxu1 %v268_v33 }
 0x105   :  { %v1044_v34 = vpop.f32.mrb[8].mxu0  ;;  %1056 = vmatprep.subr.bf16.mxu1 %v269_v31 }
 0x106   :  { %v219_v35 = vpop.f32.mrb[9].mxu0 }
 0x107   :  { %v1045_v36 = vpop.f32.mrb[10].mxu0 }
 0x108   :  { %v271_v37 = vpack.c.bf16 %v1045_v36, %v1044_v34  ;;  %v222_v38 = vpop.f32.mrb[11].mxu0  ;;  %1057 = vmatpush3.bf16.msra.mxu1 %v269_v31 }
 0x109   :  { %v270_v39 = vpack.c.bf16 %v222_v38, %v219_v35 }
 0x10b   :  { %1058 = vmatprep.subr.bf16.mxu1 %v270_v39 }
 0x10c   :  { %1059 = vmatpush3.bf16.msra.mxu1 %v270_v39 }
 0x10d   :  { %v1048_v40 = vpop.f32.mrb[12].mxu0  ;;  %1060 = vmatprep.subr.bf16.mxu1 %v271_v37 }
 0x10e   :  { %v235_v41 = vpop.f32.mrb[13].mxu0 }
 0x10f   :  { %v1049_v42 = vpop.f32.mrb[14].mxu0 }
 0x110   :  { %v273_v43 = vpack.c.bf16 %v1049_v42, %v1048_v40  ;;  %v238_v44 = vpop.f32.mrb[15].mxu0  ;;  %1061 = vmatpush3.bf16.msra.mxu1 %v271_v37 }
 0x111   :  { %v272_v45 = vpack.c.bf16 %v238_v44, %v235_v41 }
 0x113   :  { %1062 = vmatprep.subr.bf16.mxu1 %v272_v45 }
 0x114   :  { %1063 = vmatpush3.bf16.msra.mxu1 %v272_v45 }
 0x115   :  { %1064 = vmatprep.subr.bf16.mxu1 %v273_v43 }
 0x118   :  { %1065 = vmatpush3.bf16.msra.mxu1 %v273_v43 }
 0x11b   :  { %1067 = vmatmul.mubr.bf16.vlgmr.msra.gmra.mrb[0].mxu1 %v1163_v46 }
 0x11c   :  { %1070 = vmatprep.mubr.bf16.mxu1 %v1164_v47 }
 0x123   :  { %1071 = vmatmul.mubr.bf16.gmra.mrb[4].mxu1 %v1165_v48 }
 0x124   :  { %1074 = vmatprep.mubr.bf16.mxu1 %v1166_v49 }
 0x12b   :  { %1075 = vmatmul.mubr.bf16.gmra.mrb[8].mxu1 %v1167_v50 }
 0x12c   :  { %1078 = vmatprep.mubr.bf16.mxu1 %v1168_v51 }
 0x133   :  { %1079 = vmatmul.mubr.bf16.gmra.mrb[12].mxu1 %v1169_v52 }
 0x1ee   :  { %v1068_v58 = vpop.f32.mrb[0].mxu1 }
 0x1ef   :  { %v372_v59 = vadd.f32 %v1068_v58, %v1320_v56  ;;  %v363_v60 = vpop.f32.mrb[1].mxu1 }
 0x1f0   :  { %v364_v61 = vadd.f32 %v1320_v56, %v363_v60  ;;  %v1069_v62 = vpop.f32.mrb[2].mxu1 }
 0x1f1   :  { %v450_v63 = vmul.f32 %v1325_v57, %v372_v59  ;;  %v375_v0 = vadd.f32 %v1069_v62, %v1320_v56  ;;  %v366_v1 = vpop.f32.mrb[3].mxu1  ;;  %vm428_vm0 = vcmp.gt.f32.partialorder %v372_v59, 0.0 }
 0x1f2   :  { %v448_v2 = vmul.f32 %v1325_v57, %v364_v61  ;;  %v367_v3 = vadd.f32 %v1320_v56, %v366_v1  ;;  %vm426_vm1 = vcmp.gt.f32.partialorder %v364_v61, 0.0 }
 0x1f3   :  { %vm429_vm2 = vcmp.gt.f32.partialorder %v375_v0, 0.0  ;;  %v451_v4 = vmul.f32 %v1325_v57, %v375_v0  ;;  %v466_v6 = vsel %vm428_vm0, %v372_v59, %v450_v63 }
 0x1f4   :  { %vm427_vm3 = vcmp.gt.f32.partialorder %v367_v3, 0.0  ;;  %v449_v5 = vmul.f32 %v1325_v57, %v367_v3  ;;  %v464_v10 = vsel %vm426_vm1, %v364_v61, %v448_v2 }
 0x1f5   :  { %v467_v7 = vsel %vm429_vm2, %v375_v0, %v451_v4 }
 0x1f6   :  { %v481_v8 = vpack.c.bf16 %v467_v7, %v466_v6  ;;  %v1072_v9 = vpop.f32.mrb[4].mxu1  ;;  %v465_v11 = vsel %vm427_vm3, %v367_v3, %v449_v5 }
 0x1f7   :  { %v388_v12 = vadd.f32 %v1072_v9, %v1320_v56  ;;  %v379_v13 = vpop.f32.mrb[5].mxu1  ;;  %v480_v14 = vpack.c.bf16 %v465_v11, %v464_v10 }
 0x1f8   :  { %v380_v15 = vadd.f32 %v1320_v56, %v379_v13  ;;  %v1073_v16 = vpop.f32.mrb[6].mxu1 }
 0x1f9   :  { %v454_v17 = vmul.f32 %v1325_v57, %v388_v12  ;;  %v391_v18 = vadd.f32 %v1073_v16, %v1320_v56  ;;  %v382_v19 = vpop.f32.mrb[7].mxu1  ;;  %1098 = vmatprep.mubr.bf16.mxu0 %v480_v14  ;;  %vm432_vm4 = vcmp.gt.f32.partialorder %v388_v12, 0.0 }
 0x1fa   :  { %v452_v20 = vmul.f32 %v1325_v57, %v380_v15  ;;  %v383_v21 = vadd.f32 %v1320_v56, %v382_v19  ;;  %1099 = vmatmul.mubr.bf16.vlgmr.msra.gmra.mrb[16].mxu0 %v481_v8  ;;  %vm430_vm5 = vcmp.gt.f32.partialorder %v380_v15, 0.0 }
 0x1fb   :  { %vm433_vm6 = vcmp.gt.f32.partialorder %v391_v18, 0.0  ;;  %v455_v22 = vmul.f32 %v1325_v57, %v391_v18  ;;  %v470_v24 = vsel %vm432_vm4, %v388_v12, %v454_v17 }
 0x1fc   :  { %vm431_vm7 = vcmp.gt.f32.partialorder %v383_v21, 0.0  ;;  %v453_v23 = vmul.f32 %v1325_v57, %v383_v21  ;;  %v468_v27 = vsel %vm430_vm5, %v380_v15, %v452_v20 }
 0x1fd   :  { %v471_v25 = vsel %vm433_vm6, %v391_v18, %v455_v22 }
 0x1fe   :  { %v1076_v26 = vpop.f32.mrb[8].mxu1  ;;  %v469_v28 = vsel %vm431_vm7, %v383_v21, %v453_v23  ;;  %v483_v29 = vpack.c.bf16 %v471_v25, %v470_v24 }
 0x1ff   :  { %v404_v30 = vadd.f32 %v1076_v26, %v1320_v56  ;;  %v395_v31 = vpop.f32.mrb[9].mxu1  ;;  %v482_v32 = vpack.c.bf16 %v469_v28, %v468_v27  ;;  %v1179_v28 = vld [vmem:[%s1470_s0 + $0x8] sm:$0xff]  }
 0x200   :  { %v396_v33 = vadd.f32 %v1320_v56, %v395_v31  ;;  %v1077_v34 = vpop.f32.mrb[10].mxu1  ;;  %v1182_v31 = vld [vmem:[%s1470_s0 + $0x20] sm:$0xff]  }
 0x201   :  { %v458_v35 = vmul.f32 %v1325_v57, %v404_v30  ;;  %v407_v36 = vadd.f32 %v1077_v34, %v1320_v56  ;;  %v398_v37 = vpop.f32.mrb[11].mxu1  ;;  %1102 = vmatprep.mubr.bf16.mxu0 %v482_v32  ;;  %vm436_vm8 = vcmp.gt.f32.partialorder %v404_v30, 0.0  ;;  %v1183_v32 = vld [vmem:[%s1470_s0 + $0x28] sm:$0xff]   ;;  %v1185_v34 = vld [vmem:[%s1470_s0 + $0x38] sm:$0xff]  }
 0x202   :  { %v456_v38 = vmul.f32 %v1325_v57, %v396_v33  ;;  %v399_v39 = vadd.f32 %v1320_v56, %v398_v37  ;;  %1103 = vmatmul.mubr.bf16.gmra.mrb[20].mxu0 %v483_v29  ;;  %vm434_vm9 = vcmp.gt.f32.partialorder %v396_v33, 0.0  ;;  %v1180_v29 = vld [vmem:[%s1470_s0 + $0x10] sm:$0xff]  }
 0x203   :  { %vm437_vm10 = vcmp.gt.f32.partialorder %v407_v36, 0.0  ;;  %v459_v40 = vmul.f32 %v1325_v57, %v407_v36  ;;  %v474_v42 = vsel %vm436_vm8, %v404_v30, %v458_v35  ;;  %v1181_v30 = vld [vmem:[%s1470_s0 + $0x18] sm:$0xff]   ;;  %v1386_v35 = vld [vmem:[%s1472_s4 + $0x1] ss:$0 sm:$0xff] }
 0x204   :  { %vm435_vm11 = vcmp.gt.f32.partialorder %v399_v39, 0.0  ;;  %v457_v41 = vmul.f32 %v1325_v57, %v399_v39  ;;  %v472_v45 = vsel %vm434_vm9, %v396_v33, %v456_v38  ;;  %v1184_v33 = vld [vmem:[%s1470_s0 + $0x30] sm:$0xff]  }
 0x205   :  { %v475_v43 = vsel %vm437_vm10, %v407_v36, %v459_v40 }
 0x206   :  { %v1080_v44 = vpop.f32.mrb[12].mxu1  ;;  %v473_v46 = vsel %vm435_vm11, %v399_v39, %v457_v41  ;;  %v485_v47 = vpack.c.bf16 %v475_v43, %v474_v42 }
 0x207   :  { %v420_v48 = vadd.f32 %v1080_v44, %v1320_v56  ;;  %v411_v49 = vpop.f32.mrb[13].mxu1  ;;  %v484_v50 = vpack.c.bf16 %v473_v46, %v472_v45 }
 0x208   :  { %v412_v51 = vadd.f32 %v1320_v56, %v411_v49  ;;  %v1081_v52 = vpop.f32.mrb[14].mxu1 }
 0x209   :  { %v462_v53 = vmul.f32 %v1325_v57, %v420_v48  ;;  %v423_v54 = vadd.f32 %v1081_v52, %v1320_v56  ;;  %v414_v55 = vpop.f32.mrb[15].mxu1  ;;  %1106 = vmatprep.mubr.bf16.mxu0 %v484_v50  ;;  %vm440_vm12 = vcmp.gt.f32.partialorder %v420_v48, 0.0 }
 0x20a   :  { %v460_v58 = vmul.f32 %v1325_v57, %v412_v51  ;;  %v415_v59 = vadd.f32 %v1320_v56, %v414_v55  ;;  %1107 = vmatmul.mubr.bf16.gmra.mrb[24].mxu0 %v485_v47  ;;  %vm438_vm13 = vcmp.gt.f32.partialorder %v412_v51, 0.0  ;;  %v1178_v56 = vld [vmem:[%s1470_s0] sm:$0xff]  }
 0x20b   :  { %vm441_vm14 = vcmp.gt.f32.partialorder %v423_v54, 0.0  ;;  %v463_v60 = vmul.f32 %v1325_v57, %v423_v54  ;;  %v478_v62 = vsel %vm440_vm12, %v420_v48, %v462_v53  ;;  %1130 = vmatprep.mubr.bf16.mxu1 %v1178_v56 }
 0x20c   :  { %vm439_vm15 = vcmp.gt.f32.partialorder %v415_v59, 0.0  ;;  %v461_v61 = vmul.f32 %v1325_v57, %v415_v59  ;;  %v476_v0 = vsel %vm438_vm13, %v412_v51, %v460_v58 }
 0x20d   :  { %v479_v63 = vsel %vm441_vm14, %v423_v54, %v463_v60 }
 0x20e   :  { %v477_v1 = vsel %vm439_vm15, %v415_v59, %v461_v61  ;;  %v487_v2 = vpack.c.bf16 %v479_v63, %v478_v62 }
 0x20f   :  { %v486_v3 = vpack.c.bf16 %v477_v1, %v476_v0 }
 0x211   :  { %1110 = vmatprep.mubr.bf16.mxu0 %v486_v3 }
 0x212   :  { %1111 = vmatmul.mubr.bf16.gmra.mrb[28].mxu0 %v487_v2 }
 0x2cd   :  { %v1100_v4 = vpop.f32.mrb[16].mxu0 }
 0x2ce   :  { %v602_v5 = vpop.f32.mrb[17].mxu0 }
 0x2cf   :  { %v1101_v6 = vpop.f32.mrb[18].mxu0 }
 0x2d0   :  { %v682_v7 = vpack.c.bf16 %v1101_v6, %v1100_v4  ;;  %v605_v8 = vpop.f32.mrb[19].mxu0 }
 0x2d1   :  { %v681_v9 = vpack.c.bf16 %v605_v8, %v602_v5 }
 0x2d3   :  { %1114 = vmatprep.subr.bf16.mxu1 %v681_v9 }
 0x2d4   :  { %1115 = vmatpush3.bf16.msra.mxu1 %v681_v9 }
 0x2d5   :  { %v1104_v10 = vpop.f32.mrb[20].mxu0  ;;  %1116 = vmatprep.subr.bf16.mxu1 %v682_v7 }
 0x2d6   :  { %v618_v11 = vpop.f32.mrb[21].mxu0 }
 0x2d7   :  { %v1105_v12 = vpop.f32.mrb[22].mxu0 }
 0x2d8   :  { %v684_v13 = vpack.c.bf16 %v1105_v12, %v1104_v10  ;;  %v621_v14 = vpop.f32.mrb[23].mxu0  ;;  %1117 = vmatpush3.bf16.msra.mxu1 %v682_v7 }
 0x2d9   :  { %v683_v15 = vpack.c.bf16 %v621_v14, %v618_v11 }
 0x2db   :  { %1118 = vmatprep.subr.bf16.mxu1 %v683_v15 }
 0x2dc   :  { %1119 = vmatpush3.bf16.msra.mxu1 %v683_v15 }
 0x2dd   :  { %v1108_v16 = vpop.f32.mrb[24].mxu0  ;;  %1120 = vmatprep.subr.bf16.mxu1 %v684_v13 }
 0x2de   :  { %v634_v17 = vpop.f32.mrb[25].mxu0 }
 0x2df   :  { %v1109_v18 = vpop.f32.mrb[26].mxu0 }
 0x2e0   :  { %v686_v19 = vpack.c.bf16 %v1109_v18, %v1108_v16  ;;  %v637_v20 = vpop.f32.mrb[27].mxu0  ;;  %1121 = vmatpush3.bf16.msra.mxu1 %v684_v13 }
 0x2e1   :  { %v685_v21 = vpack.c.bf16 %v637_v20, %v634_v17 }
 0x2e3   :  { %1122 = vmatprep.subr.bf16.mxu1 %v685_v21 }
 0x2e4   :  { %1123 = vmatpush3.bf16.msra.mxu1 %v685_v21 }
 0x2e5   :  { %v1112_v22 = vpop.f32.mrb[28].mxu0  ;;  %1124 = vmatprep.subr.bf16.mxu1 %v686_v19 }
 0x2e6   :  { %v650_v23 = vpop.f32.mrb[29].mxu0 }
 0x2e7   :  { %v1113_v24 = vpop.f32.mrb[30].mxu0 }
 0x2e8   :  { %v688_v25 = vpack.c.bf16 %v1113_v24, %v1112_v22  ;;  %v653_v26 = vpop.f32.mrb[31].mxu0  ;;  %1125 = vmatpush3.bf16.msra.mxu1 %v686_v19 }
 0x2e9   :  { %v687_v27 = vpack.c.bf16 %v653_v26, %v650_v23 }
 0x2eb   :  { %1126 = vmatprep.subr.bf16.mxu1 %v687_v27 }
 0x2ec   :  { %1127 = vmatpush3.bf16.msra.mxu1 %v687_v27 }
 0x2ed   :  { %1128 = vmatprep.subr.bf16.mxu1 %v688_v25 }
 0x2f0   :  { %1129 = vmatpush3.bf16.msra.mxu1 %v688_v25 }
 0x2f3   :  { %1131 = vmatmul.mubr.bf16.vlgmr.msra.gmra.mrb[16].mxu1 %v1179_v28 }
 0x2f4   :  { %1134 = vmatprep.mubr.bf16.mxu1 %v1180_v29 }
 0x2fb   :  { %1135 = vmatmul.mubr.bf16.gmra.mrb[20].mxu1 %v1181_v30 }
 0x2fc   :  { %1138 = vmatprep.mubr.bf16.mxu1 %v1182_v31 }
 0x303   :  { %1139 = vmatmul.mubr.bf16.gmra.mrb[24].mxu1 %v1183_v32 }
 0x304   :  { %1142 = vmatprep.mubr.bf16.mxu1 %v1184_v33 }
 0x30b   :  { %1143 = vmatmul.mubr.bf16.gmra.mrb[28].mxu1 %v1185_v34 }
 0x3c6   :  { %v1132_v36 = vpop.f32.mrb[16].mxu1 }
 0x3c7   :  { %v788_v37 = vadd.f32 %v1132_v36, %v1386_v35  ;;  %v779_v38 = vpop.f32.mrb[17].mxu1 }
 0x3c8   :  { %v780_v39 = vadd.f32 %v1386_v35, %v779_v38  ;;  %v1133_v40 = vpop.f32.mrb[18].mxu1 }
 0x3c9   :  { %vm844_vm0 = vcmp.gt.f32.partialorder %v788_v37, 0.0  ;;  %v860_v41 = vmul.f32 %v1325_v57, %v788_v37  ;;  %v791_v42 = vadd.f32 %v1133_v40, %v1386_v35  ;;  %v782_v43 = vpop.f32.mrb[19].mxu1 }
 0x3ca   :  { %vm842_vm1 = vcmp.gt.f32.partialorder %v780_v39, 0.0  ;;  %v858_v44 = vmul.f32 %v1325_v57, %v780_v39  ;;  %v783_v45 = vadd.f32 %v1386_v35, %v782_v43 }
 0x3cb   :  { %v876_v46 = vsel %vm844_vm0, %v788_v37, %v860_v41  ;;  %vm845_vm2 = vcmp.gt.f32.partialorder %v791_v42, 0.0  ;;  %v861_v47 = vmul.f32 %v1325_v57, %v791_v42 }
 0x3cc   :  { %892 = vst [vmem:[%s1474_s6 + $0x10] sm:$0xff] %v876_v46  ;;  %v874_v48 = vsel %vm842_vm1, %v780_v39, %v858_v44  ;;  %vm843_vm3 = vcmp.gt.f32.partialorder %v783_v45, 0.0  ;;  %v859_v49 = vmul.f32 %v1325_v57, %v783_v45 }
 0x3cd   :  { %890 = vst [vmem:[%s1474_s6] sm:$0xff] %v874_v48  ;;  %v877_v50 = vsel %vm845_vm2, %v791_v42, %v861_v47 }
 0x3ce   :  { %893 = vst [vmem:[%s1474_s6 + $0x18] sm:$0xff] %v877_v50  ;;  %v875_v51 = vsel %vm843_vm3, %v783_v45, %v859_v49  ;;  %v1136_v52 = vpop.f32.mrb[20].mxu1 }
 0x3cf   :  { %891 = vst [vmem:[%s1474_s6 + $0x8] sm:$0xff] %v875_v51  ;;  %v804_v53 = vadd.f32 %v1136_v52, %v1386_v35  ;;  %v795_v54 = vpop.f32.mrb[21].mxu1 }
 0x3d0   :  { %v796_v55 = vadd.f32 %v1386_v35, %v795_v54  ;;  %v1137_v58 = vpop.f32.mrb[22].mxu1 }
 0x3d1   :  { %vm848_vm4 = vcmp.gt.f32.partialorder %v804_v53, 0.0  ;;  %v864_v59 = vmul.f32 %v1325_v57, %v804_v53  ;;  %v807_v60 = vadd.f32 %v1137_v58, %v1386_v35  ;;  %v798_v61 = vpop.f32.mrb[23].mxu1 }
 0x3d2   :  { %vm846_vm5 = vcmp.gt.f32.partialorder %v796_v55, 0.0  ;;  %v862_v62 = vmul.f32 %v1325_v57, %v796_v55  ;;  %v799_v63 = vadd.f32 %v1386_v35, %v798_v61 }
 0x3d3   :  { %v880_v0 = vsel %vm848_vm4, %v804_v53, %v864_v59  ;;  %vm849_vm6 = vcmp.gt.f32.partialorder %v807_v60, 0.0  ;;  %v865_v1 = vmul.f32 %v1325_v57, %v807_v60 }
 0x3d4   :  { %896 = vst [vmem:[%s1474_s6 + $0x30] sm:$0xff] %v880_v0  ;;  %v878_v2 = vsel %vm846_vm5, %v796_v55, %v862_v62  ;;  %vm847_vm7 = vcmp.gt.f32.partialorder %v799_v63, 0.0  ;;  %v863_v3 = vmul.f32 %v1325_v57, %v799_v63 }
 0x3d5   :  { %894 = vst [vmem:[%s1474_s6 + $0x20] sm:$0xff] %v878_v2  ;;  %v881_v56 = vsel %vm849_vm6, %v807_v60, %v865_v1 }
 0x3d6   :  { %897 = vst [vmem:[%s1474_s6 + $0x38] sm:$0xff] %v881_v56  ;;  %v879_v4 = vsel %vm847_vm7, %v799_v63, %v863_v3  ;;  %v1140_v5 = vpop.f32.mrb[24].mxu1 }
 0x3d7   :  { %895 = vst [vmem:[%s1474_s6 + $0x28] sm:$0xff] %v879_v4  ;;  %v820_v6 = vadd.f32 %v1140_v5, %v1386_v35  ;;  %v811_v7 = vpop.f32.mrb[25].mxu1 }
 0x3d8   :  { %v812_v8 = vadd.f32 %v1386_v35, %v811_v7  ;;  %v1141_v9 = vpop.f32.mrb[26].mxu1 }
 0x3d9   :  { %vm852_vm8 = vcmp.gt.f32.partialorder %v820_v6, 0.0  ;;  %v868_v10 = vmul.f32 %v1325_v57, %v820_v6  ;;  %v823_v11 = vadd.f32 %v1141_v9, %v1386_v35  ;;  %v814_v12 = vpop.f32.mrb[27].mxu1 }
 0x3da   :  { %vm850_vm9 = vcmp.gt.f32.partialorder %v812_v8, 0.0  ;;  %v866_v13 = vmul.f32 %v1325_v57, %v812_v8  ;;  %v815_v14 = vadd.f32 %v1386_v35, %v814_v12 }
 0x3db   :  { %v884_v15 = vsel %vm852_vm8, %v820_v6, %v868_v10  ;;  %vm853_vm10 = vcmp.gt.f32.partialorder %v823_v11, 0.0  ;;  %v869_v16 = vmul.f32 %v1325_v57, %v823_v11 }
 0x3dc   :  { %900 = vst [vmem:[%s1474_s6 + $0x50] sm:$0xff] %v884_v15  ;;  %v882_v17 = vsel %vm850_vm9, %v812_v8, %v866_v13  ;;  %vm851_vm11 = vcmp.gt.f32.partialorder %v815_v14, 0.0  ;;  %v867_v18 = vmul.f32 %v1325_v57, %v815_v14 }
 0x3dd   :  { %898 = vst [vmem:[%s1474_s6 + $0x40] sm:$0xff] %v882_v17  ;;  %v885_v19 = vsel %vm853_vm10, %v823_v11, %v869_v16 }
 0x3de   :  { %901 = vst [vmem:[%s1474_s6 + $0x58] sm:$0xff] %v885_v19  ;;  %v883_v20 = vsel %vm851_vm11, %v815_v14, %v867_v18  ;;  %v1144_v21 = vpop.f32.mrb[28].mxu1 }
 0x3df   :  { %899 = vst [vmem:[%s1474_s6 + $0x48] sm:$0xff] %v883_v20  ;;  %v836_v22 = vadd.f32 %v1144_v21, %v1386_v35  ;;  %v827_v23 = vpop.f32.mrb[29].mxu1 }
 0x3e0   :  { %v828_v24 = vadd.f32 %v1386_v35, %v827_v23  ;;  %v1145_v25 = vpop.f32.mrb[30].mxu1 }
 0x3e1   :  { %vm856_vm12 = vcmp.gt.f32.partialorder %v836_v22, 0.0  ;;  %v872_v26 = vmul.f32 %v1325_v57, %v836_v22  ;;  %v839_v27 = vadd.f32 %v1145_v25, %v1386_v35  ;;  %v830_v28 = vpop.f32.mrb[31].mxu1 }
 0x3e2   :  { %vm854_vm13 = vcmp.gt.f32.partialorder %v828_v24, 0.0  ;;  %v870_v29 = vmul.f32 %v1325_v57, %v828_v24  ;;  %v831_v30 = vadd.f32 %v1386_v35, %v830_v28 }
 0x3e3   :  { %v888_v31 = vsel %vm856_vm12, %v836_v22, %v872_v26  ;;  %vm857_vm14 = vcmp.gt.f32.partialorder %v839_v27, 0.0  ;;  %v873_v32 = vmul.f32 %v1325_v57, %v839_v27 }
 0x3e4   :  { %904 = vst [vmem:[%s1474_s6 + $0x70] sm:$0xff] %v888_v31  ;;  %v886_v33 = vsel %vm854_vm13, %v828_v24, %v870_v29  ;;  %vm855_vm15 = vcmp.gt.f32.partialorder %v831_v30, 0.0  ;;  %v871_v34 = vmul.f32 %v1325_v57, %v831_v30 }
 0x3e5   :  { %902 = vst [vmem:[%s1474_s6 + $0x60] sm:$0xff] %v886_v33  ;;  %v889_v36 = vsel %vm857_vm14, %v839_v27, %v873_v32 }
 0x3e6   :  { %905 = vst [vmem:[%s1474_s6 + $0x78] sm:$0xff] %v889_v36  ;;  %v887_v35 = vsel %vm855_vm15, %v831_v30, %v871_v34 }
 0x3e7   :  { %903 = vst [vmem:[%s1474_s6 + $0x68] sm:$0xff] %v887_v35 }

</bundles_post_ra>
